<compile_context>
chip_gen: v7x
topology: tpu7x:2x2x1
jax: 0.10.0
libtpu: 0.0.40
codegen_flags: <defaults>
</compile_context>

<pallas_src>
import jax
import jax.numpy as jnp
from jax.experimental import pallas as pl
from jax.experimental.pallas import tpu as pltpu


def _round_up(x, m):
    return ((x + m - 1) // m) * m


def _disc_kernel(x_ref,
                 w1_ref, b1_ref,
                 w2_ref, b2_ref,
                 w3_ref, b3_ref,
                 w4_ref, b4_ref,
                 o_ref):
    # Layer 1: cast the f32 x tile to bf16 here (cheap VPU work, hidden under
    # the MXU) instead of rewriting x in HBM in the wrapper.
    x = x_ref[...].astype(w1_ref.dtype)
    h = jnp.dot(x, w1_ref[...], preferred_element_type=jnp.float32)
    h = jnp.maximum(h + b1_ref[...], 0.0)

    # Layer 2: (bm, 4h) @ (4h, 2h) + b2 -> ReLU
    h = jnp.dot(h.astype(w2_ref.dtype), w2_ref[...],
                preferred_element_type=jnp.float32)
    h = jnp.maximum(h + b2_ref[...], 0.0)

    # Layer 3: (bm, 2h) @ (2h, h) + b3 -> ReLU
    h = jnp.dot(h.astype(w3_ref.dtype), w3_ref[...],
                preferred_element_type=jnp.float32)
    h = jnp.maximum(h + b3_ref[...], 0.0)

    # Output layer as an NT matmul: (1, h) x (bm, h)^T -> (1, bm).
    # Lane-dense row output => unmasked stores; avoids a lane-sparse (bm, 1)
    # column matmul.
    # TODO(synk): for large d3, confirm once via pl.lower_as_mlir that this
    # lowers to a transposed-operand MXU matmul (no explicit XLU transpose of h).
    logits = jax.lax.dot_general(
        w4_ref[...], h.astype(w4_ref.dtype),
        dimension_numbers=(((1,), (1,)), ((), ())),
        preferred_element_type=jnp.float32)
    logits = logits + b4_ref[0]                               # scalar bias (SMEM)
    o_ref[0] = jax.nn.sigmoid(logits).astype(o_ref.dtype)     # (1, block_m) row


def _choose_block_m(B, in_dim, d1, d2, d3, weights_single_buffered,
                    vmem_budget_bytes=40 * 1024 * 1024):
    """Adaptive batch tile: round_up(B, 16), capped at 512 and at a conservative
    working-set budget so it never spills on v7x's 64 MiB VMEM."""
    wbuf = 1 if weights_single_buffered else 2
    w_bytes = ((in_dim * d1 + d1 * d2 + d2 * d3 + d3) * 2     # bf16 weights
               + (d1 + d2 + d3) * 4) * wbuf                   # f32 bias rows

    def working_set(bm):
        acts = bm * (d1 + d2 + d3) * 6          # f32 activation + bf16 copy / layer
        x_t = 2 * bm * in_dim * 4               # double-buffered f32 x tile
        out = 2 * bm * 4                        # double-buffered f32 output row
        return acts + x_t + out + w_bytes

    bm = min(512, _round_up(max(B, 1), 16))
    while bm > 16 and working_set(bm) > vmem_budget_bytes:
        bm = _round_up(bm // 2, 16)
    # Give v7x's two TensorCores something to do when the batch is big enough
    # to split without dropping below a fully packed bf16 (16-row) tile.
    if pl.cdiv(B, bm) == 1 and B >= 64:
        bm = _round_up(pl.cdiv(B, 2), 16)
    return bm


def discriminator_forward(x, params, *, matmul_dtype=jnp.bfloat16):
    """x: (batch, input_dim) float32.  Returns (batch, 1) float32 probabilities."""
    (w1, b1), (w2, b2), (w3, b3), (w4, b4) = params
    B, in_dim = x.shape
    d1, d2, d3 = w1.shape[1], w2.shape[1], w3.shape[1]

    # Single-buffer the constant-index weights only once double-buffering them
    # would cost meaningful VMEM (large hidden_dim; v7x headroom). The tiny
    # demo weights keep the default (maximally portable) pipelining.
    weight_bytes = (in_dim * d1 + d1 * d2 + d2 * d3 + d3) * 2
    single_buffer_weights = weight_bytes > (4 * 1024 * 1024)

    block_m = _choose_block_m(B, in_dim, d1, d2, d3, single_buffer_weights)
    assert block_m % 16 == 0, "bf16 packs 16 rows per vreg"
    num_tiles = pl.cdiv(B, block_m)

    # Weights as bf16 (tiny vs x; cast once), biases as (1, out) f32 rows,
    # b4 as an SMEM scalar; x stays f32 and is cast inside the kernel.
    w1c = w1.astype(matmul_dtype)
    w2c = w2.astype(matmul_dtype)
    w3c = w3.astype(matmul_dtype)
    w4r = w4.reshape(1, d3).astype(matmul_dtype)   # row vector for the NT matmul
    b1r = b1.reshape(1, d1).astype(jnp.float32)
    b2r = b2.reshape(1, d2).astype(jnp.float32)
    b3r = b3.reshape(1, d3).astype(jnp.float32)
    b4s = b4.reshape(1).astype(jnp.float32)

    const = lambda i: (0, 0)   # weights/biases: same (only) block every step
    if single_buffer_weights:
        w_spec = lambda shape: pl.BlockSpec(shape, const,
                                            pipeline_mode=pl.Buffered(1))
    else:
        w_spec = lambda shape: pl.BlockSpec(shape, const)

    # TODO(synk): for very large hidden_dim (weights no longer VMEM-resident),
    # add an "arbitrary" reduction grid axis over d1 with an f32 VMEM
    # accumulator instead of keeping W2 whole-resident.

    out = pl.pallas_call(
        _disc_kernel,
        out_shape=jax.ShapeDtypeStruct((num_tiles, 1, block_m), jnp.float32),
        grid_spec=pltpu.PrefetchScalarGridSpec(
            num_scalar_prefetch=0,
            grid=(num_tiles,),
            in_specs=[
                pl.BlockSpec((block_m, in_dim), lambda i: (i, 0)),  # x tile (f32)
                w_spec((in_dim, d1)),   # W1
                w_spec((1, d1)),        # b1
                w_spec((d1, d2)),       # W2
                w_spec((1, d2)),        # b2
                w_spec((d2, d3)),       # W3
                w_spec((1, d3)),        # b3
                w_spec((1, d3)),        # W4 as a (1, h) row
                pl.BlockSpec(memory_space=pltpu.MemorySpace.SMEM),  # b4 scalar
            ],
            out_specs=pl.BlockSpec((1, 1, block_m), lambda i: (i, 0, 0)),
        ),
        compiler_params=pltpu.CompilerParams(
            dimension_semantics=("parallel",),   # batch tiles are independent
        ),
    )(x, w1c, b1r, w2c, b2r, w3c, b3r, w4r, b4s)

    # (num_tiles, 1, block_m) -> (num_tiles*block_m, 1); drop ragged-tile rows.
    return out.reshape(num_tiles * block_m, 1)[:B]


def init_params(key, input_dim, hidden_dim):
    """Deterministic init; weights stored as (in, out) so fwd is x @ W + b."""
    dims = [(input_dim, hidden_dim * 4),
            (hidden_dim * 4, hidden_dim * 2),
            (hidden_dim * 2, hidden_dim),
            (hidden_dim, 1)]
    params = []
    for (fan_in, fan_out) in dims:
        key, kw, kb = jax.random.split(key, 3)
        bound = 1.0 / jnp.sqrt(fan_in)   # nn.Linear default U(-1/sqrt(in), 1/sqrt(in))
        w = jax.random.uniform(kw, (fan_in, fan_out), jnp.float32, -bound, bound)
        b = jax.random.uniform(kb, (fan_out,), jnp.float32, -bound, bound)
        params.append((w, b))
    return params


def reference_forward(x, params, matmul_dtype=jnp.bfloat16):
    """Pure-JAX reference with the same bf16-operand / f32-accum quantization.
    (Versus a pure-f32 PyTorch model the error would be larger -- expected.)"""
    h = x
    n = len(params)
    for i, (w, b) in enumerate(params):
        h = jnp.dot(h.astype(matmul_dtype), w.astype(matmul_dtype),
                    preferred_element_type=jnp.float32) + b.astype(jnp.float32)
        if i < n - 1:
            h = jnp.maximum(h, 0.0)
    return jax.nn.sigmoid(h)


if __name__ == "__main__":
    key = jax.random.PRNGKey(0)
    batch, input_dim, hidden_dim = 16, 32, 32   # small synthetic shapes

    kx, kp = jax.random.split(key)
    x = jax.random.normal(kx, (batch, input_dim), jnp.float32)
    params = init_params(kp, input_dim, hidden_dim)

    out = jax.block_until_ready(discriminator_forward(x, params))
    ref = reference_forward(x, params)

    assert out.shape == (batch, 1)
    assert bool(jnp.all(jnp.isfinite(out)))
    assert jnp.allclose(out, ref, atol=2e-4, rtol=2e-4), "mismatch vs reference"

    print("KERNEL_OK")
</pallas_src>

<mosaic_0001>
module attributes {stable_mosaic.version = 11 : i64} {
  func.func @_disc_kernel(%arg0: i32, %arg1: memref<16x32xf32, #tpu.memory_space<vmem>>, %arg2: memref<32x128xbf16, #tpu.memory_space<vmem>>, %arg3: memref<1x128xf32, #tpu.memory_space<vmem>>, %arg4: memref<128x64xbf16, #tpu.memory_space<vmem>>, %arg5: memref<1x64xf32, #tpu.memory_space<vmem>>, %arg6: memref<64x32xbf16, #tpu.memory_space<vmem>>, %arg7: memref<1x32xf32, #tpu.memory_space<vmem>>, %arg8: memref<1x32xbf16, #tpu.memory_space<vmem>>, %arg9: memref<1xf32, #tpu.memory_space<smem>>, %arg10: memref<1x1x16xf32, #tpu.memory_space<vmem>>) attributes {dimension_semantics = [#tpu.dimension_semantics<parallel>], iteration_bounds = array<i64: 1>, scalar_prefetch = 0 : i64, scratch_operands = 0 : i64, tpu.core_type = #tpu.core_type<tc>, window_params = [{transform_indices = @transform_0, window_bounds = array<i64: 16, 32>}, {pipeline_mode = #tpu.pipeline_mode<synchronous>, transform_indices = @transform_1, window_bounds = array<i64: 32, 128>}, {pipeline_mode = #tpu.pipeline_mode<synchronous>, transform_indices = @transform_2, window_bounds = array<i64: 1, 128>}, {pipeline_mode = #tpu.pipeline_mode<synchronous>, transform_indices = @transform_3, window_bounds = array<i64: 128, 64>}, {pipeline_mode = #tpu.pipeline_mode<synchronous>, transform_indices = @transform_4, window_bounds = array<i64: 1, 64>}, {pipeline_mode = #tpu.pipeline_mode<synchronous>, transform_indices = @transform_5, window_bounds = array<i64: 64, 32>}, {pipeline_mode = #tpu.pipeline_mode<synchronous>, transform_indices = @transform_6, window_bounds = array<i64: 1, 32>}, {pipeline_mode = #tpu.pipeline_mode<synchronous>, transform_indices = @transform_7, window_bounds = array<i64: 1, 32>}, {transform_indices = @transform_8, window_bounds = array<i64: 1>}, {transform_indices = @transform_9, window_bounds = array<i64: 1, 1, 16>}]} {
    %c0 = arith.constant 0 : index
    %c0_0 = arith.constant 0 : index
    %0 = vector.load %arg1[%c0, %c0_0] : memref<16x32xf32, #tpu.memory_space<vmem>>, vector<16x32xf32>
    %1 = arith.truncf %0 : vector<16x32xf32> to vector<16x32xbf16>
    %c0_1 = arith.constant 0 : index
    %c0_2 = arith.constant 0 : index
    %2 = vector.load %arg2[%c0_1, %c0_2] : memref<32x128xbf16, #tpu.memory_space<vmem>>, vector<32x128xbf16>
    %cst = arith.constant dense<0.000000e+00> : vector<16x128xf32>
    %3 = tpu.matmul %1, %2, %cst {dimension_numbers = #tpu.dot_dimension_numbers<[1], [0], [0], [1], [0, 0, 1, 1], [], []>} : vector<16x32xbf16>, vector<32x128xbf16>, vector<16x128xf32> -> vector<16x128xf32>
    %c0_3 = arith.constant 0 : index
    %c0_4 = arith.constant 0 : index
    %4 = vector.load %arg3[%c0_3, %c0_4] : memref<1x128xf32, #tpu.memory_space<vmem>>, vector<1x128xf32>
    %5 = vector.broadcast %4 : vector<1x128xf32> to vector<16x128xf32>
    %6 = arith.addf %3, %5 : vector<16x128xf32>
    %cst_5 = arith.constant 0.000000e+00 : f32
    %7 = vector.broadcast %cst_5 : f32 to vector<16x128xf32>
    %8 = arith.maximumf %6, %7 : vector<16x128xf32>
    %9 = arith.truncf %8 : vector<16x128xf32> to vector<16x128xbf16>
    %c0_6 = arith.constant 0 : index
    %c0_7 = arith.constant 0 : index
    %10 = vector.load %arg4[%c0_6, %c0_7] : memref<128x64xbf16, #tpu.memory_space<vmem>>, vector<128x64xbf16>
    %cst_8 = arith.constant dense<0.000000e+00> : vector<16x64xf32>
    %11 = tpu.matmul %9, %10, %cst_8 {dimension_numbers = #tpu.dot_dimension_numbers<[1], [0], [0], [1], [0, 0, 1, 1], [], []>} : vector<16x128xbf16>, vector<128x64xbf16>, vector<16x64xf32> -> vector<16x64xf32>
    %c0_9 = arith.constant 0 : index
    %c0_10 = arith.constant 0 : index
    %12 = vector.load %arg5[%c0_9, %c0_10] : memref<1x64xf32, #tpu.memory_space<vmem>>, vector<1x64xf32>
    %13 = vector.broadcast %12 : vector<1x64xf32> to vector<16x64xf32>
    %14 = arith.addf %11, %13 : vector<16x64xf32>
    %cst_11 = arith.constant 0.000000e+00 : f32
    %15 = vector.broadcast %cst_11 : f32 to vector<16x64xf32>
    %16 = arith.maximumf %14, %15 : vector<16x64xf32>
    %17 = arith.truncf %16 : vector<16x64xf32> to vector<16x64xbf16>
    %c0_12 = arith.constant 0 : index
    %c0_13 = arith.constant 0 : index
    %18 = vector.load %arg6[%c0_12, %c0_13] : memref<64x32xbf16, #tpu.memory_space<vmem>>, vector<64x32xbf16>
    %cst_14 = arith.constant dense<0.000000e+00> : vector<16x32xf32>
    %19 = tpu.matmul %17, %18, %cst_14 {dimension_numbers = #tpu.dot_dimension_numbers<[1], [0], [0], [1], [0, 0, 1, 1], [], []>} : vector<16x64xbf16>, vector<64x32xbf16>, vector<16x32xf32> -> vector<16x32xf32>
    %c0_15 = arith.constant 0 : index
    %c0_16 = arith.constant 0 : index
    %20 = vector.load %arg7[%c0_15, %c0_16] : memref<1x32xf32, #tpu.memory_space<vmem>>, vector<1x32xf32>
    %21 = vector.broadcast %20 : vector<1x32xf32> to vector<16x32xf32>
    %22 = arith.addf %19, %21 : vector<16x32xf32>
    %cst_17 = arith.constant 0.000000e+00 : f32
    %23 = vector.broadcast %cst_17 : f32 to vector<16x32xf32>
    %24 = arith.maximumf %22, %23 : vector<16x32xf32>
    %c0_18 = arith.constant 0 : index
    %c0_19 = arith.constant 0 : index
    %25 = vector.load %arg8[%c0_18, %c0_19] : memref<1x32xbf16, #tpu.memory_space<vmem>>, vector<1x32xbf16>
    %26 = arith.truncf %24 : vector<16x32xf32> to vector<16x32xbf16>
    %cst_20 = arith.constant dense<0.000000e+00> : vector<1x16xf32>
    %27 = tpu.matmul %25, %26, %cst_20 {dimension_numbers = #tpu.dot_dimension_numbers<[1], [1], [0], [0], [0, 0, 1, 0], [], []>} : vector<1x32xbf16>, vector<16x32xbf16>, vector<1x16xf32> -> vector<1x16xf32>
    %c0_21 = arith.constant 0 : index
    %28 = memref.load %arg9[%c0_21] : memref<1xf32, #tpu.memory_space<smem>>
    %29 = vector.broadcast %28 : f32 to vector<1x16xf32>
    %30 = arith.addf %27, %29 : vector<1x16xf32>
    %31 = arith.negf %30 : vector<1x16xf32>
    %32 = math.exp %31 : vector<1x16xf32>
    %cst_22 = arith.constant 1.000000e+00 : f32
    %33 = vector.broadcast %cst_22 : f32 to vector<1x16xf32>
    %34 = arith.addf %33, %32 : vector<1x16xf32>
    %35 = arith.divf %33, %34 : vector<1x16xf32>
    %c0_23 = arith.constant 0 : index
    %c0_24 = arith.constant 0 : index
    %c0_25 = arith.constant 0 : index
    %36 = vector.load %arg10[%c0_23, %c0_24, %c0_25] : memref<1x1x16xf32, #tpu.memory_space<vmem>>, vector<1x1x16xf32>
    %37 = vector.shape_cast %36 : vector<1x1x16xf32> to vector<1x16xf32>
    %38 = vector.shape_cast %35 : vector<1x16xf32> to vector<1x1x16xf32>
    tpu.vector_store %arg10[%c0_23, %c0_24, %c0_25], %38 {strides = array<i32>} : memref<1x1x16xf32, #tpu.memory_space<vmem>>, vector<1x1x16xf32>,
    return
  }
  func.func @transform_0(%arg0: i32) -> (i32, i32) {
    %c0_i32 = arith.constant 0 : i32
    %c0_i32_0 = arith.constant 0 : i32
    return %arg0, %c0_i32 : i32, i32
  }
  func.func @transform_1(%arg0: i32) -> (i32, i32) {
    %c0_i32 = arith.constant 0 : i32
    %c0_i32_0 = arith.constant 0 : i32
    %c0_i32_1 = arith.constant 0 : i32
    return %c0_i32, %c0_i32_0 : i32, i32
  }
  func.func @transform_2(%arg0: i32) -> (i32, i32) {
    %c0_i32 = arith.constant 0 : i32
    %c0_i32_0 = arith.constant 0 : i32
    %c0_i32_1 = arith.constant 0 : i32
    return %c0_i32, %c0_i32_0 : i32, i32
  }
  func.func @transform_3(%arg0: i32) -> (i32, i32) {
    %c0_i32 = arith.constant 0 : i32
    %c0_i32_0 = arith.constant 0 : i32
    %c0_i32_1 = arith.constant 0 : i32
    return %c0_i32, %c0_i32_0 : i32, i32
  }
  func.func @transform_4(%arg0: i32) -> (i32, i32) {
    %c0_i32 = arith.constant 0 : i32
    %c0_i32_0 = arith.constant 0 : i32
    %c0_i32_1 = arith.constant 0 : i32
    return %c0_i32, %c0_i32_0 : i32, i32
  }
  func.func @transform_5(%arg0: i32) -> (i32, i32) {
    %c0_i32 = arith.constant 0 : i32
    %c0_i32_0 = arith.constant 0 : i32
    %c0_i32_1 = arith.constant 0 : i32
    return %c0_i32, %c0_i32_0 : i32, i32
  }
  func.func @transform_6(%arg0: i32) -> (i32, i32) {
    %c0_i32 = arith.constant 0 : i32
    %c0_i32_0 = arith.constant 0 : i32
    %c0_i32_1 = arith.constant 0 : i32
    return %c0_i32, %c0_i32_0 : i32, i32
  }
  func.func @transform_7(%arg0: i32) -> (i32, i32) {
    %c0_i32 = arith.constant 0 : i32
    %c0_i32_0 = arith.constant 0 : i32
    %c0_i32_1 = arith.constant 0 : i32
    return %c0_i32, %c0_i32_0 : i32, i32
  }
  func.func @transform_8(%arg0: i32) -> i32 {
    %c0_i32 = arith.constant 0 : i32
    %c0_i32_0 = arith.constant 0 : i32
    return %c0_i32 : i32
  }
  func.func @transform_9(%arg0: i32) -> (i32, i32, i32) {
    %c0_i32 = arith.constant 0 : i32
    %c0_i32_0 = arith.constant 0 : i32
    %c0_i32_1 = arith.constant 0 : i32
    return %arg0, %c0_i32, %c0_i32_0 : i32, i32, i32
  }
}

</mosaic_0001>

<bundles_post_ra>
// kernel: tpu_custom_call.1
= control target key start
LH: loop header
LB: loop body
LE: loop exit
PB: predicated region body
PF: predicated region fallthrough
CT: control target
= control target key end

     0   :  { %v513_v1 = vmov 0.0   ;;  %vm514_vm0 = vmmov 0   ;;  %vm61_vm1 = vcmask 261120   ;;  %s667_s0 = inlined_call_operand.vmem [shape: f32[16,32], index: 0, kind: input, shape index: {}]   ;;  %s668_s1 = inlined_call_operand.vmem [shape: bf16[32,128], index: 1, kind: input, shape index: {}]   ;;  %s669_s2 = inlined_call_operand.vmem [shape: f32[1,128], index: 2, kind: input, shape index: {}]   ;;  %s670_s3 = inlined_call_operand.vmem [shape: bf16[128,64], index: 3, kind: input, shape index: {}]   ;;  %s671_s4 = inlined_call_operand.vmem [shape: f32[1,64], index: 4, kind: input, shape index: {}]   ;;  %s672_s5 = inlined_call_operand.vmem [shape: bf16[64,32], index: 5, kind: input, shape index: {}]   ;;  %s673_s6 = inlined_call_operand.vmem [shape: f32[1,32], index: 6, kind: input, shape index: {}]   ;;  %s674_s7 = inlined_call_operand.vmem [shape: bf16[1,32], index: 7, kind: input, shape index: {}]   ;;  %s675_s8 = inlined_call_operand.<no memory space> [shape: f32[1], index: 8, kind: input, shape index: {}]   ;;  %s676_s9 = inlined_call_operand.hbm [shape: f32[1,1,16], index: 9, kind: output, shape index: {}]  }
   0x1   :  { %v471_v0 = vld [vmem:[%s668_s1] sm:$0xff]   ;;  %422 = vmatprep.subr.bf16.mxu0 %v513_v1  ;;  %v472_v2 = vld [vmem:[%s668_s1 + $0x8] sm:$0xff]   ;;  %430 = vmatprep.subr.bf16.mxu1 %v513_v1  ;;  %v475_v8 = vld [vmem:[%s670_s3 + $0x10] sm:$0xff]  }
   0x2   :  { %423 = vmatpush3.bf16.msra.mxu0 %v471_v0  ;;  %426 = vmatprep.mubr.msk.bf16.mxu0 %vm514_vm0, %v513_v1  ;;  %v35_v3 = vld [vmem:[%s667_s0] sm:$0xff]  ;;  %v36_v4 = vld [vmem:[%s667_s0 + $0x8] sm:$0xff]  ;;  %v476_v9 = vld [vmem:[%s670_s3 + $0x18] sm:$0xff]  }
   0x3   :  { %424 = vmatprep.subr.bf16.mxu0 %v513_v1  ;;  %v473_v5 = vld [vmem:[%s670_s3] sm:$0xff]   ;;  %446 = vmatprep.mubr.msk.bf16.mxu1 %vm514_vm0, %v513_v1  ;;  %v37_v6 = vpack.c.bf16 %v36_v4, %v35_v3  ;;  %v474_v7 = vld [vmem:[%s670_s3 + $0x8] sm:$0xff]  }
   0x4   :  { %431 = vmatpush3.bf16.msra.mxu1 %v473_v5 }
   0x5   :  { %432 = vmatprep.subr.bf16.mxu1 %v513_v1 }
   0x6   :  { %425 = vmatpush3.bf16.msra.mxu0 %v472_v2 }
   0x7   :  { %450 = vmatprep.subr.bf16.mxu0 %v513_v1 }
   0x8   :  { %433 = vmatpush3.bf16.msra.mxu1 %v474_v7 }
   0x9   :  { %427 = vmatmul.mubr.msk.bf16.vlgmr.msra.gmra.mrb[0].mxu0 %vm61_vm1, %v37_v6  ;;  %434 = vmatprep.subr.bf16.mxu1 %v513_v1 }
   0xa   :  { %458 = vmatprep.mubr.msk.bf16.mxu0 %vm514_vm0, %v513_v1 }
   0xc   :  { %435 = vmatpush3.bf16.msra.mxu1 %v475_v8 }
   0xd   :  { %15 = vsyncpa [#allocation4], 0  ;;  %436 = vmatprep.subr.bf16.mxu1 %v513_v1  ;;  %v477_v10 = vld [vmem:[%s670_s3 + $0x20] sm:$0xff]   ;;  %v478_v11 = vld [vmem:[%s670_s3 + $0x28] sm:$0xff]   ;;  %vm263_vm2 = vcmask 523264   ;;  %v313_v50 = vstv %s675_s8  ;;  %s515_s21 = smov [#allocation3]  }
   0xe   :  { %v479_v12 = vld [vmem:[%s670_s3 + $0x30] sm:$0xff]   ;;  %v480_v13 = vld [vmem:[%s670_s3 + $0x38] sm:$0xff]   ;;  %v481_v14 = vld [vmem:[%s672_s5] sm:$0xff]   ;;  %s374_s22 = sshll.u32 %s515_s21, 4  ;;  %vm366_vm3 = vcmask 122880   ;;  %s375_s22 = int_to_ptr.vmem [resolvable:$true] %s374_s22 }
   0xf   :  { %451 = vmatpush3.bf16.msra.mxu0 %v481_v14  ;;  %v482_v15 = vld [vmem:[%s672_s5 + $0x8] sm:$0xff]   ;;  %v382_v16 = vld [vmem:[%s669_s2] ss:$0 sm:$0xff]  ;;  %v483_v26 = vld [vmem:[%s672_s5 + $0x10] sm:$0xff]   ;;  %s493_s23 = scalar_lea.vmem %s375_s22, 32  ;;  %p494_p1 = scmp.lt.s32.totalorder %s375_s22, %s375_s22 }
  0x10   :  { %437 = vmatpush3.bf16.msra.mxu1 %v476_v9  ;;  %452 = vmatprep.subr.bf16.mxu0 %v513_v1  ;;  %v484_v27 = vld [vmem:[%s672_s5 + $0x18] sm:$0xff]   ;;  %v386_v28 = vld [vmem:[%s671_s4] ss:$0 sm:$0xff] }
  0x11   :  { %438 = vmatprep.subr.bf16.mxu1 %v513_v1  ;;  %v395_v38 = vld [vmem:[%s673_s6] ss:$0 sm:$0xff] }
  0x12   :  { %v310_v49 = vld [vmem:[%s674_s7] sm:$0x1]  ;;  %s489_s7 = scalar_lea.vmem %s375_s22, 16 }
  0x13   :  { %453 = vmatpush3.bf16.msra.mxu0 %v482_v15  ;;  %p490_p0 = scmp.ne.s32.totalorder %s375_s22, %s489_s7  ;;  %p495_p2 = scmp.lt.s32.totalorder %s493_s23, %s489_s7 }
  0x14   :  { %439 = vmatpush3.bf16.msra.mxu1 %v477_v10  ;;  %454 = vmatprep.subr.bf16.mxu0 %v513_v1 }
  0x15   :  { %440 = vmatprep.subr.bf16.mxu1 %v513_v1  ;;  %p496_p3 = por %p495_p2, %p494_p1 }
  0x17   :  { %455 = vmatpush3.bf16.msra.mxu0 %v483_v26  ;;  %p497_p4 = pnand %p496_p3, %p490_p0 }
  0x18   :  { %441 = vmatpush3.bf16.msra.mxu1 %v478_v11  ;;  %456 = vmatprep.subr.bf16.mxu0 %v513_v1 }
  0x19   :  { %442 = vmatprep.subr.bf16.mxu1 %v513_v1 }
  0x1b   :  { %457 = vmatpush3.bf16.msra.mxu0 %v484_v27 }
  0x1c   :  { %443 = vmatpush3.bf16.msra.mxu1 %v479_v12  ;;  %462 = vmatprep.subr.bf16.mxu0 %v513_v1 }
  0x1d   :  { %444 = vmatprep.subr.bf16.mxu1 %v513_v1 }
  0x20   :  { %445 = vmatpush3.bf16.msra.mxu1 %v480_v13 }
  0xdc   :  { %v99_v17 = vpop.f32.mrb[0].mxu0 }
  0xdd   :  { %v100_v18 = vadd.f32 %v382_v16, %v99_v17  ;;  %v428_v19 = vpop.f32.mrb[1].mxu0 }
  0xde   :  { %v102_v20 = vpop.f32.mrb[2].mxu0 }
  0xdf   :  { %v103_v21 = vadd.f32 %v382_v16, %v102_v20  ;;  %v429_v22 = vpop.f32.mrb[3].mxu0  ;;  %v106_v23 = vmax.f32 %v100_v18, 0.0 }
  0xe1   :  { %v107_v24 = vmax.f32 %v103_v21, 0.0 }
  0xe3   :  { %v108_v25 = vpack.c.bf16 %v107_v24, %v106_v23 }
  0xe5   :  { %447 = vmatmul.mubr.bf16.vlgmr.msra.gmra.mrb[0].mxu1 %v108_v25 }
 0x1b8   :  { %v214_v29 = vpop.f32.mrb[0].mxu1 }
 0x1b9   :  { %v215_v30 = vadd.f32 %v386_v28, %v214_v29  ;;  %v448_v31 = vpop.f32.mrb[1].mxu1 }
 0x1ba   :  { %v217_v32 = vpop.f32.mrb[2].mxu1 }
 0x1bb   :  { %v218_v33 = vadd.f32 %v386_v28, %v217_v32  ;;  %v449_v34 = vpop.f32.mrb[3].mxu1  ;;  %v221_v35 = vmax.f32 %v215_v30, 0.0 }
 0x1bd   :  { %v222_v36 = vmax.f32 %v218_v33, 0.0 }
 0x1bf   :  { %v223_v37 = vpack.c.bf16 %v222_v36, %v221_v35 }
 0x1c1   :  { %459 = vmatmul.mubr.msk.bf16.vlgmr.msra.gmra.mrb[4].mxu0 %vm263_vm2, %v223_v37 }
 0x1c2   :  { %464 = vmatprep.mubr.msk.bf16.mxu0 %vm514_vm0, %v513_v1 }
 0x294   :  { %v301_v39 = vpop.f32.mrb[4].mxu0 }
 0x295   :  { %v302_v40 = vadd.f32 %v395_v38, %v301_v39  ;;  %v460_v41 = vpop.f32.mrb[5].mxu0 }
 0x296   :  { %v304_v42 = vpop.f32.mrb[6].mxu0 }
 0x297   :  { %v305_v43 = vadd.f32 %v395_v38, %v304_v42  ;;  %v461_v44 = vpop.f32.mrb[7].mxu0  ;;  %v308_v45 = vmax.f32 %v302_v40, 0.0 }
 0x299   :  { %v309_v46 = vmax.f32 %v305_v43, 0.0 }
 0x29b   :  { %v311_v47 = vpack.c.bf16 %v309_v46, %v308_v45 }
 0x29d   :  { %v318_v48 = vsel %vm61_vm1, %v311_v47, 0 }
 0x29e   :  { %463 = vmatpush3.bf16.xpose.msra.mxu0 %v318_v48 }
 0x2a5   :  { %465 = vmatmul.mubr.msk.bf16.vlgmr.msra.gmra.mrb[8].mxu0 %vm61_vm1, %v310_v49 }
 0x378   :  { %v354_v51 = vpop.f32.mrb[8].mxu0 }
 0x379   :  { %v355_v52 = vadd.f32 %v354_v51, %v313_v50  ;;  %v466_v53 = vpop.f32.mrb[9].mxu0 }
 0x37a   :  { %v357_v54 = vpop.f32.mrb[10].mxu0 }
 0x37b   :  { %v402_v55 = vmul.f32 -1.442695, %v355_v52  ;;  %v467_v56 = vpop.f32.mrb[11].mxu0 }
 0x37d   :  { %485 = vpow2.f32 %v402_v55 }
 0x387   :  { %v486_v57 = vpop.eup %485 }
 0x388   :  { %v363_v58 = vadd.f32 1.0, %v486_v57 }
 0x38a   :  { %487 = vrcp.f32 %v363_v58 }
 0x394   :  { %v488_v59 = vpop.eup %487 }
 0x395   :  { %367 = vst.msk [vmem:[#allocation3] sm:$0x1] %vm366_vm3, %v488_v59 }
 0x396   :  { %500 = shalt.err (!%p497_p4)
}
 0x397   :  { %s501_s25 = scalar_lea.hbm %s676_s9, 16 }
 0x398   :  { %p502_p5 = scmp.ne.s32.totalorder %s676_s9, %s501_s25  ;;  %p505_p6 = scmp.lt.u32.totalorder %s501_s25, %s676_s9 }
 0x39a   :  { %p507_p7 = pnand %p505_p6, %p502_p5 }
 0x39c   :  { %510 = shalt.err (!%p507_p7)
}
 0x39d   :  { %377 = dma.vmem_to_hbm [thread:$0]  %s375_s22, 16, %s676_s9, [#allocation4]  }
 0x39e   :  { %511 = dma.done.wait [#allocation4], 16  }
 0x39f   :  { %512 = vsyncadd [#allocation4], 4294967280 }
 0x3a0   :  { %381 = vsyncpa [#allocation4], 1 }

</bundles_post_ra>
